<compile_context>
chip_gen: v7x
topology: tpu7x:2x2x1
jax: 0.10.0
libtpu: 0.0.40
codegen_flags: <defaults>
</compile_context>

<pallas_src>
import functools

import jax
import jax.numpy as jnp
from jax.experimental import pallas as pl
from jax.experimental.pallas import tpu as pltpu


# ----------------------------------------------------------------------------
# Kernel
# ----------------------------------------------------------------------------
def _experts_kernel(glu, fused_gu, acc_in_out, ti, activation_fn,
                    idx_ref, x_ref, *refs):
    # refs = ([w_gate, w_up] | [w_gateup_fused | w_up], w_down, out[, acc])
    if glu and not fused_gu:
        wg_ref, wu_ref, wd_ref, o_ref, *rest = refs
    else:
        w_main_ref, wd_ref, o_ref, *rest = refs
    acc_ref = o_ref if acc_in_out else rest[0]

    it = pl.program_id(2)                    # reduction (i-tile) axis, innermost

    @pl.when(it == 0)
    def _init():
        acc_ref[...] = jnp.zeros(acc_ref.shape, acc_ref.dtype)

    x = x_ref[...]                           # (tc, H)
    if glu:
        if fused_gu:
            # Single wide MXU call; slice at a lane-aligned (ti % 128 == 0) boundary.
            s = jnp.dot(x, w_main_ref[...], preferred_element_type=jnp.float32)
            g, u = s[:, :ti], s[:, ti:]
        else:
            g = jnp.dot(x, wg_ref[...], preferred_element_type=jnp.float32)
            u = jnp.dot(x, wu_ref[...], preferred_element_type=jnp.float32)
        h = activation_fn(g) * u             # f32 GLU math, (tc, ti)
    else:
        h = activation_fn(jnp.dot(x, w_main_ref[...],
                                  preferred_element_type=jnp.float32))

    # K-reduction over i-tiles into the persistent f32 accumulator.
    acc_ref[...] += jnp.dot(h.astype(wd_ref.dtype), wd_ref[...],
                            preferred_element_type=jnp.float32)

    if not acc_in_out:
        @pl.when(it == pl.num_programs(2) - 1)
        def _finalize():
            o_ref[...] = acc_ref[...].astype(o_ref.dtype)


# ----------------------------------------------------------------------------
# Generation-aware tile / budget selection
# ----------------------------------------------------------------------------
def _vmem_capacity_bytes():
    try:
        cap = int(pltpu.get_tpu_info().vmem_capacity_bytes)
        if cap > 0:
            return cap
    except Exception:
        pass
    return 64 << 20      # conservative fallback (v7x per-core VMEM)


def _pick_i_tile(I, H, glu, cd_itemsize, weight_budget):
    """Largest 128-multiple I-tile whose double-buffered weight streams fit."""
    if I % 128 != 0:
        return I                              # full-dim block satisfies lane rule
    per_icol = ((2 if glu else 1) + 1) * H * cd_itemsize * 2   # 2x buffered
    ti = (weight_budget // max(per_icol, 1)) // 128 * 128
    ti = int(min(max(ti, 128), I))
    while I % ti:
        ti -= 128
    # v6e/v7x MXUs are 256x256: prefer ti >= 256 whenever I allows.
    if ti < 256 and I % 256 == 0:
        ti = 256
    return ti


def _pick_c_tile(C, H, cd_itemsize, out_itemsize, needs_acc_scratch, c_budget):
    """Largest 8-multiple capacity tile whose x/out/acc footprint fits."""
    per_row = (2 * H * cd_itemsize + 2 * H * out_itemsize
               + (H * 4 if needs_acc_scratch else 0))
    if C % 8 != 0 or C * per_row <= c_budget:
        return C
    tc = (c_budget // max(per_row, 1)) // 8 * 8
    tc = int(min(max(tc, 8), C))
    while C % tc:
        tc -= 8
    return max(tc, 8)


# ----------------------------------------------------------------------------
# One-time weight preparation (hoisted out of the per-call path)
# ----------------------------------------------------------------------------
def prepare_expert_weights(w_gate_up, w_down, *, glu=True,
                           compute_dtype=jnp.bfloat16, i_tile=None):
    """Cast to compute dtype, per-tile-interleave gate|up columns, pick I-tile.

    Call once and pass the result to experts_forward(prepared=...).  Re-doing
    this every call rewrites the full expert weights in HBM and can dominate
    wall clock for a bandwidth-bound MoE.
    """
    E, H, out_cols = w_gate_up.shape
    E2, I, H2 = w_down.shape
    assert E == E2 and H == H2
    assert out_cols == (2 * I if glu else I)

    cd = (jnp.dtype(compute_dtype) if compute_dtype is not None
          else jnp.dtype(w_gate_up.dtype))

    budget = _vmem_capacity_bytes() - (6 << 20)   # compiler-scratch headroom
    weight_budget = (budget * 3) // 5             # ~60% of VMEM for weight streams
    ti = (int(i_tile) if i_tile is not None
          else _pick_i_tile(I, H, glu, cd.itemsize, weight_budget))
    assert I % ti == 0, f"i_tile={ti} must divide I={I}"
    fused = bool(glu and ti % 128 == 0)

    wd = w_down.astype(cd)
    if glu:
        wgu = w_gate_up.astype(cd)
        wg, wu = wgu[:, :, :I], wgu[:, :, I:]
        if fused:
            n_i = I // ti
            w_main = jnp.concatenate(
                [wg.reshape(E, H, n_i, ti), wu.reshape(E, H, n_i, ti)],
                axis=-1).reshape(E, H, 2 * I)     # per-tile [gate | up]
            weights = (w_main, wd)
        else:
            weights = (wg, wu, wd)
    else:
        weights = (w_gate_up.astype(cd), wd)

    return dict(weights=weights, glu=glu, fused=fused, ti=ti,
                E=E, H=H, I=I, dtype=cd)


# ----------------------------------------------------------------------------
# Forward
# ----------------------------------------------------------------------------
def experts_forward(hidden_states, w_gate_up=None, w_down=None,
                    expert_indices=None, glu=True, activation_fn=jax.nn.silu,
                    compute_dtype=jnp.bfloat16, i_tile=None, c_tile=None,
                    prepared=None):
    """Pallas equivalent of Experts.forward (EP size == 1 path)."""
    if prepared is None:
        prepared = prepare_expert_weights(w_gate_up, w_down, glu=glu,
                                          compute_dtype=compute_dtype,
                                          i_tile=i_tile)
    glu = prepared["glu"]
    fused = prepared["fused"]
    ti = prepared["ti"]
    E_total, H, I = prepared["E"], prepared["H"], prepared["I"]
    cd = prepared["dtype"]
    weights = prepared["weights"]

    if expert_indices is None:
        expert_indices = jnp.arange(E_total, dtype=jnp.int32)
    else:
        expert_indices = jnp.asarray(expert_indices, dtype=jnp.int32)
    Ep = int(expert_indices.shape[0])

    e, C, h = hidden_states.shape
    assert e in (1, Ep) and h == H
    broadcast_hidden = (e == 1)

    out_dtype = jnp.dtype(hidden_states.dtype)
    # If the output is f32, accumulate straight into the resident output block
    # (no separate f32 scratch -> VMEM headroom on v7x).
    acc_in_out = (out_dtype == jnp.float32)
    x_in = hidden_states.astype(cd)

    n_i = I // ti
    n_w_streams = (2 if glu else 1) + 1
    weight_bytes = n_w_streams * H * ti * cd.itemsize * 2     # double buffered

    budget = _vmem_capacity_bytes() - (6 << 20)
    if c_tile is not None:
        tc = int(c_tile)
        assert C % tc == 0 and (tc % 8 == 0 or tc == C)
    else:
        tc = _pick_c_tile(C, H, cd.itemsize, out_dtype.itemsize,
                          not acc_in_out, budget - weight_bytes)
    n_c = C // tc

    # --------------------------------------------------------------- specs
    if broadcast_hidden:
        # Block index constant along the expert axis -> tile stays resident.
        x_spec = pl.BlockSpec((None, tc, H), lambda ei, ci, it, idx: (0, ci, 0))
    else:
        x_spec = pl.BlockSpec((None, tc, H), lambda ei, ci, it, idx: (ei, ci, 0))
    in_specs = [x_spec]
    inputs = [x_in]

    if glu and fused:
        in_specs.append(pl.BlockSpec((None, H, 2 * ti),
                                     lambda ei, ci, it, idx: (idx[ei], 0, it)))
        inputs.append(weights[0])
    elif glu:
        in_specs.append(pl.BlockSpec((None, H, ti),
                                     lambda ei, ci, it, idx: (idx[ei], 0, it)))
        inputs.append(weights[0])
        in_specs.append(pl.BlockSpec((None, H, ti),
                                     lambda ei, ci, it, idx: (idx[ei], 0, it)))
        inputs.append(weights[1])
    else:
        in_specs.append(pl.BlockSpec((None, H, ti),
                                     lambda ei, ci, it, idx: (idx[ei], 0, it)))
        inputs.append(weights[0])
    in_specs.append(pl.BlockSpec((None, ti, H),
                                 lambda ei, ci, it, idx: (idx[ei], it, 0)))
    inputs.append(weights[-1])

    out_spec = pl.BlockSpec((None, tc, H), lambda ei, ci, it, idx: (ei, ci, 0))
    scratch_shapes = [] if acc_in_out else [pltpu.VMEM((tc, H), jnp.float32)]

    grid_spec = pltpu.PrefetchScalarGridSpec(
        num_scalar_prefetch=1,
        grid=(Ep, n_c, n_i),                    # reduction axis innermost
        in_specs=in_specs,
        out_specs=out_spec,
        scratch_shapes=scratch_shapes,
    )

    # VMEM accounting (weights + x + out double buffered, plus accumulator).
    x_bytes = 2 * tc * H * cd.itemsize
    out_bytes = 2 * tc * H * out_dtype.itemsize
    acc_bytes = 0 if acc_in_out else tc * H * 4
    est = weight_bytes + x_bytes + out_bytes + acc_bytes
    cap = _vmem_capacity_bytes()
    vmem_limit = int(min(cap, max(est + (8 << 20), 32 << 20)))

    flops = 2 * Ep * C * H * I * ((2 if glu else 1) + 1)
    bytes_accessed = (Ep * (H * I * (2 if glu else 1) + I * H) * cd.itemsize
                      + e * C * H * cd.itemsize
                      + Ep * C * H * out_dtype.itemsize)
    cost = pl.CostEstimate(flops=int(flops), transcendentals=int(Ep * C * I),
                           bytes_accessed=int(bytes_accessed))

    kernel = functools.partial(_experts_kernel, glu, fused, acc_in_out, ti,
                               activation_fn)

    return pl.pallas_call(
        kernel,
        out_shape=jax.ShapeDtypeStruct((Ep, C, H), out_dtype),
        grid_spec=grid_spec,
        compiler_params=pltpu.CompilerParams(
            dimension_semantics=("parallel", "parallel", "arbitrary"),
            vmem_limit_bytes=vmem_limit),
        cost_estimate=cost,
    )(expert_indices, *inputs)


# ----------------------------------------------------------------------------
# Pure-JAX reference (mirrors the kernel's cast points)
# ----------------------------------------------------------------------------
def _reference(hidden_states, w_gate_up, w_down, expert_indices=None,
               glu=True, activation_fn=jax.nn.silu, compute_dtype=None):
    E_total = w_gate_up.shape[0]
    I = w_down.shape[1]
    if expert_indices is None:
        expert_indices = jnp.arange(E_total, dtype=jnp.int32)
    cd = (jnp.dtype(compute_dtype) if compute_dtype is not None
          else jnp.dtype(hidden_states.dtype))
    wgu = w_gate_up[expert_indices].astype(cd)
    wd = w_down[expert_indices].astype(cd)
    Ep = expert_indices.shape[0]
    x = jnp.broadcast_to(hidden_states,
                         (Ep,) + hidden_states.shape[1:]).astype(cd)
    s = jnp.einsum('ech,ehi->eci', x, wgu, preferred_element_type=jnp.float32)
    if glu:
        h = activation_fn(s[..., :I]) * s[..., I:]
    else:
        h = activation_fn(s)
    out = jnp.einsum('eci,eih->ech', h.astype(cd), wd,
                     preferred_element_type=jnp.float32)
    return out.astype(hidden_states.dtype)


if __name__ == "__main__":
    key = jax.random.PRNGKey(0)
    k1, k2, k3, k4, k5, k6, k7 = jax.random.split(key, 7)

    # Small shapes (I chosen as a multiple of 128 so the tiled path is hit).
    E, C, H, I = 4, 16, 64, 256
    hidden = jax.random.normal(k1, (E, C, H), dtype=jnp.float32)
    w_gate_up = jax.random.normal(k2, (E, H, 2 * I), dtype=jnp.float32) * 0.05
    w_down = jax.random.normal(k3, (E, I, H), dtype=jnp.float32) * 0.05

    # 1) f32 compute, forced i_tile=128 & c_tile=8: exercises the i-reduction,
    #    the capacity-tile axis, fused gate|up tiles and the
    #    accumulate-into-output (f32 output) path.
    out = experts_forward(hidden, w_gate_up, w_down, glu=True,
                          compute_dtype=jnp.float32, i_tile=128, c_tile=8)
    out = jax.block_until_ready(out)
    ref = _reference(hidden, w_gate_up, w_down, glu=True,
                     compute_dtype=jnp.float32)
    assert out.shape == (E, C, H)
    assert jnp.allclose(out, ref, atol=2e-3, rtol=2e-3), \
        f"f32 mismatch: {jnp.max(jnp.abs(out - ref))}"

    # 2) Pre-prepared bf16 weights (hoisted cast/fuse), auto tile sizes,
    #    bf16 hidden/output -> separate f32 accumulator scratch path.
    prepared = prepare_expert_weights(w_gate_up, w_down, glu=True,
                                      compute_dtype=jnp.bfloat16)
    hidden_bf = hidden.astype(jnp.bfloat16)
    out_bf = experts_forward(hidden_bf, prepared=prepared)
    out_bf = jax.block_until_ready(out_bf)
    ref_bf = _reference(hidden_bf, w_gate_up, w_down, glu=True,
                        compute_dtype=jnp.bfloat16)
    assert jnp.allclose(out_bf.astype(jnp.float32), ref_bf.astype(jnp.float32),
                        atol=2e-2, rtol=2e-2), \
        f"bf16 mismatch: {jnp.max(jnp.abs(out_bf.astype(jnp.float32) - ref_bf.astype(jnp.float32)))}"

    # 3) Selective expert loading with broadcast hidden state (1, C, H),
    #    reusing the prepared weights (no per-call weight rewrite); expert
    #    gather via scalar prefetch.
    expert_indices = jnp.array([2, 0], dtype=jnp.int32)
    hs1 = jax.random.normal(k4, (1, C, H), dtype=jnp.float32)
    out_sel = experts_forward(hs1, expert_indices=expert_indices,
                              prepared=prepared)
    out_sel = jax.block_until_ready(out_sel)
    ref_sel = _reference(hs1, w_gate_up, w_down, expert_indices, glu=True,
                         compute_dtype=jnp.bfloat16)
    assert out_sel.shape == (2, C, H)
    assert jnp.allclose(out_sel, ref_sel, atol=1e-2, rtol=1e-2), \
        f"selective mismatch: {jnp.max(jnp.abs(out_sel - ref_sel))}"

    # 4) Non-GLU path with I not a multiple of 128 (full-dim tile fallback).
    I2 = 96
    w_up2 = jax.random.normal(k5, (E, H, I2), dtype=jnp.float32) * 0.05
    w_down2 = jax.random.normal(k6, (E, I2, H), dtype=jnp.float32) * 0.05
    out_ng = experts_forward(hidden, w_up2, w_down2, glu=False,
                             compute_dtype=jnp.float32)
    out_ng = jax.block_until_ready(out_ng)
    ref_ng = _reference(hidden, w_up2, w_down2, glu=False,
                        compute_dtype=jnp.float32)
    assert jnp.allclose(out_ng, ref_ng, atol=2e-3, rtol=2e-3), \
        f"non-glu mismatch: {jnp.max(jnp.abs(out_ng - ref_ng))}"

    # 5) GLU path with I not a multiple of 128 -> split gate/up weight stream
    #    fallback (non-fused).
    w_gu3 = jax.random.normal(k7, (E, H, 2 * I2), dtype=jnp.float32) * 0.05
    out_g3 = experts_forward(hidden, w_gu3, w_down2, glu=True,
                             compute_dtype=jnp.float32)
    out_g3 = jax.block_until_ready(out_g3)
    ref_g3 = _reference(hidden, w_gu3, w_down2, glu=True,
                        compute_dtype=jnp.float32)
    assert jnp.allclose(out_g3, ref_g3, atol=2e-3, rtol=2e-3), \
        f"glu-96 mismatch: {jnp.max(jnp.abs(out_g3 - ref_g3))}"

    print("KERNEL_OK")
</pallas_src>

<mosaic_0001>
module attributes {stable_mosaic.version = 11 : i64} {
  func.func @_experts_kernel(%arg0: i32, %arg1: i32, %arg2: i32, %arg3: memref<4xi32, #tpu.memory_space<smem>>, %arg4: memref<1x8x64xf32, #tpu.memory_space<vmem>>, %arg5: memref<1x64x256xf32, #tpu.memory_space<vmem>>, %arg6: memref<1x128x64xf32, #tpu.memory_space<vmem>>, %arg7: memref<1x8x64xf32, #tpu.memory_space<vmem>>) attributes {dimension_semantics = [#tpu.dimension_semantics<parallel>, #tpu.dimension_semantics<parallel>, #tpu.dimension_semantics<arbitrary>], iteration_bounds = array<i64: 4, 2, 2>, scalar_prefetch = 1 : i64, scratch_operands = 0 : i64, tpu.core_type = #tpu.core_type<tc>, window_params = [{transform_indices = @transform_0, window_bounds = array<i64: 1, 8, 64>}, {transform_indices = @transform_1, window_bounds = array<i64: 1, 64, 256>}, {transform_indices = @transform_2, window_bounds = array<i64: 1, 128, 64>}, {transform_indices = @transform_3, window_bounds = array<i64: 1, 8, 64>}]} {
    %c0_i32 = arith.constant 0 : i32
    %0 = arith.cmpi eq, %arg2, %c0_i32 : i32
    %1 = arith.extui %0 : i1 to i32
    %c0_i32_0 = arith.constant 0 : i32
    %2 = arith.cmpi ne, %1, %c0_i32_0 : i32
    scf.if %2 {
      %cst_17 = arith.constant 0.000000e+00 : f32
      %26 = vector.broadcast %cst_17 : f32 to vector<8x64xf32>
      %c0_18 = arith.constant 0 : index
      %c0_19 = arith.constant 0 : index
      %c0_20 = arith.constant 0 : index
      %27 = vector.load %arg7[%c0_18, %c0_19, %c0_20] : memref<1x8x64xf32, #tpu.memory_space<vmem>>, vector<1x8x64xf32>
      %28 = vector.shape_cast %27 : vector<1x8x64xf32> to vector<8x64xf32>
      %29 = vector.shape_cast %26 : vector<8x64xf32> to vector<1x8x64xf32>
      tpu.vector_store %arg7[%c0_18, %c0_19, %c0_20], %29 {strides = array<i32>} : memref<1x8x64xf32, #tpu.memory_space<vmem>>, vector<1x8x64xf32>,
    } else {
    }
    %c0 = arith.constant 0 : index
    %c0_1 = arith.constant 0 : index
    %c0_2 = arith.constant 0 : index
    %3 = vector.load %arg4[%c0, %c0_1, %c0_2] : memref<1x8x64xf32, #tpu.memory_space<vmem>>, vector<1x8x64xf32>
    %4 = vector.shape_cast %3 : vector<1x8x64xf32> to vector<8x64xf32>
    %c0_3 = arith.constant 0 : index
    %c0_4 = arith.constant 0 : index
    %c0_5 = arith.constant 0 : index
    %5 = vector.load %arg5[%c0_3, %c0_4, %c0_5] : memref<1x64x256xf32, #tpu.memory_space<vmem>>, vector<1x64x256xf32>
    %6 = vector.shape_cast %5 : vector<1x64x256xf32> to vector<64x256xf32>
    %cst = arith.constant dense<0.000000e+00> : vector<8x256xf32>
    %7 = tpu.matmul %4, %6, %cst {dimension_numbers = #tpu.dot_dimension_numbers<[1], [0], [0], [1], [0, 0, 1, 1], [], []>} : vector<8x64xf32>, vector<64x256xf32>, vector<8x256xf32> -> vector<8x256xf32>
    %8 = vector.extract_strided_slice %7 {offsets = [0, 0], sizes = [8, 128], strides = [1, 1]} : vector<8x256xf32> to vector<8x128xf32>
    %9 = vector.extract_strided_slice %7 {offsets = [0, 128], sizes = [8, 128], strides = [1, 1]} : vector<8x256xf32> to vector<8x128xf32>
    %10 = arith.negf %8 : vector<8x128xf32>
    %11 = math.exp %10 : vector<8x128xf32>
    %cst_6 = arith.constant 1.000000e+00 : f32
    %12 = vector.broadcast %cst_6 : f32 to vector<8x128xf32>
    %13 = arith.addf %12, %11 : vector<8x128xf32>
    %14 = arith.divf %12, %13 : vector<8x128xf32>
    %15 = arith.mulf %8, %14 : vector<8x128xf32>
    %16 = arith.mulf %15, %9 : vector<8x128xf32>
    %c0_7 = arith.constant 0 : index
    %c0_8 = arith.constant 0 : index
    %c0_9 = arith.constant 0 : index
    %17 = vector.load %arg7[%c0_7, %c0_8, %c0_9] : memref<1x8x64xf32, #tpu.memory_space<vmem>>, vector<1x8x64xf32>
    %18 = vector.shape_cast %17 : vector<1x8x64xf32> to vector<8x64xf32>
    %c0_10 = arith.constant 0 : index
    %c0_11 = arith.constant 0 : index
    %c0_12 = arith.constant 0 : index
    %19 = vector.load %arg6[%c0_10, %c0_11, %c0_12] : memref<1x128x64xf32, #tpu.memory_space<vmem>>, vector<1x128x64xf32>
    %20 = vector.shape_cast %19 : vector<1x128x64xf32> to vector<128x64xf32>
    %cst_13 = arith.constant dense<0.000000e+00> : vector<8x64xf32>
    %21 = tpu.matmul %16, %20, %cst_13 {dimension_numbers = #tpu.dot_dimension_numbers<[1], [0], [0], [1], [0, 0, 1, 1], [], []>} : vector<8x128xf32>, vector<128x64xf32>, vector<8x64xf32> -> vector<8x64xf32>
    %22 = arith.addf %18, %21 : vector<8x64xf32>
    %c0_14 = arith.constant 0 : index
    %c0_15 = arith.constant 0 : index
    %c0_16 = arith.constant 0 : index
    %23 = vector.load %arg7[%c0_14, %c0_15, %c0_16] : memref<1x8x64xf32, #tpu.memory_space<vmem>>, vector<1x8x64xf32>
    %24 = vector.shape_cast %23 : vector<1x8x64xf32> to vector<8x64xf32>
    %25 = vector.shape_cast %22 : vector<8x64xf32> to vector<1x8x64xf32>
    tpu.vector_store %arg7[%c0_14, %c0_15, %c0_16], %25 {strides = array<i32>} : memref<1x8x64xf32, #tpu.memory_space<vmem>>, vector<1x8x64xf32>,
    return
  }
  func.func @transform_0(%arg0: i32, %arg1: i32, %arg2: i32, %arg3: memref<4xi32, #tpu.memory_space<smem>>) -> (i32, i32, i32) {
    %c0_i32 = arith.constant 0 : i32
    %c0_i32_0 = arith.constant 0 : i32
    return %arg0, %arg1, %c0_i32 : i32, i32, i32
  }
  func.func @transform_1(%arg0: i32, %arg1: i32, %arg2: i32, %arg3: memref<4xi32, #tpu.memory_space<smem>>) -> (i32, i32, i32) {
    %0 = arith.index_cast %arg0 : i32 to index
    %1 = memref.load %arg3[%0] : memref<4xi32, #tpu.memory_space<smem>>
    %c0_i32 = arith.constant 0 : i32
    %c0_i32_0 = arith.constant 0 : i32
    return %1, %c0_i32, %arg2 : i32, i32, i32
  }
  func.func @transform_2(%arg0: i32, %arg1: i32, %arg2: i32, %arg3: memref<4xi32, #tpu.memory_space<smem>>) -> (i32, i32, i32) {
    %0 = arith.index_cast %arg0 : i32 to index
    %1 = memref.load %arg3[%0] : memref<4xi32, #tpu.memory_space<smem>>
    %c0_i32 = arith.constant 0 : i32
    %c0_i32_0 = arith.constant 0 : i32
    return %1, %arg2, %c0_i32 : i32, i32, i32
  }
  func.func @transform_3(%arg0: i32, %arg1: i32, %arg2: i32, %arg3: memref<4xi32, #tpu.memory_space<smem>>) -> (i32, i32, i32) {
    %c0_i32 = arith.constant 0 : i32
    %c0_i32_0 = arith.constant 0 : i32
    return %arg0, %arg1, %c0_i32 : i32, i32, i32
  }
}

</mosaic_0001>

<bundles_post_ra>
// kernel: tpu_custom_call.1
= control target key start
LH: loop header
LB: loop body
LE: loop exit
PB: predicated region body
PF: predicated region fallthrough
CT: control target
= control target key end

     0   :  { %s1351_s0 = inlined_call_operand.vmem [shape: s32[4], index: 0, kind: input, shape index: {}]   ;;  %s1352_s1 = inlined_call_operand.vmem [shape: f32[4,16,64], index: 1, kind: input, shape index: {}]   ;;  %s1353_s2 = inlined_call_operand.vmem [shape: f32[4,64,512], index: 2, kind: input, shape index: {}]   ;;  %s1354_s3 = inlined_call_operand.vmem [shape: f32[4,256,64], index: 3, kind: input, shape index: {}]   ;;  %s1355_s4 = inlined_call_operand.hbm [shape: f32[4,16,64], index: 4, kind: output, shape index: {}]  }
   0x1   :  { %1364 = sst [smem:[#allocation17_spill]] %s1353_s2  ;;  %s9_s17 = sshll.u32 %s1351_s0, 4  ;;  %s10_s17 = int_to_ptr.vmem [resolvable:$true] %s9_s17 }
   0x2   :  { %s892_s18 = scalar_lea.vmem %s10_s17, 16  ;;  %p897_p1 = scmp.lt.s32.totalorder %s10_s17, %s10_s17 }
   0x3   :  { %p893_p0 = scmp.ne.s32.totalorder %s10_s17, %s892_s18  ;;  %p898_p2 = scmp.lt.s32.totalorder %s892_s18, %s892_s18 }
   0x5   :  { %p899_p3 = por %p898_p2, %p897_p1 }
   0x7   :  { %p900_p4 = pnand %p899_p3, %p893_p0 }
   0x9   :  { %903 = shalt.err (!%p900_p4)  }
   0xa   :  { %s1034_s19 = smov [#allocation3]  }
   0xb   :  { %12 = dma.vmem_to_smem %s10_s17, 16, %s1034_s19, [#allocation2] }
   0xc   :  { %980 = dma.done.wait [#allocation2], 16 }
   0xd   :  { %981 = vsyncadd [#allocation2], 4294967280 }
   0xe   :  { %14 = sfence }
   0xf   :  { %15 = vsyncpa [#allocation6], 0 }
  0x10   :  { %17 = vsyncpa [#allocation6 + $0x1], 0  ;;  %s1068_s20 = smov 0   ;;  %s1070_s21 = smov 0  }
  0x11   :  { %s1072_s0 = smov 0   ;;  %s1074_s22 = smov 0  }
  0x12   :  { %s1076_s23 = smov 0   ;;  %s1078_s24 = smov 0  }
  0x13   :  { %s1080_s25 = smov 0   ;;  %s1082_s26 = smov 0  }
  0x14   :  { %s1084_s27 = smov 0   ;;  %s1086_s28 = smov 0  }
  0x15   :  { %s1088_s29 = smov 0   ;;  %s1090_s30 = smov 0  }
  0x16 LB: > { %1365 = sst [smem:[#allocation9_spill]] %s988_s20  ;;  %s35_s5 = sadd.s32 1, %s1020_s27  ;;  %s1032_s30 = sphi %s1090_s30, %s23_s30   ;;  %s1028_s29 = sphi %s1088_s29, %s1385_s29   ;;  %s1024_s28 = sphi %s1086_s28, %s1384_s28   ;;  %s1020_s27 = sphi %s1084_s27, %s1383_s27   ;;  %s1016_s26 = sphi %s1082_s26, %s1382_s26   ;;  %s1012_s25 = sphi %s1080_s25, %s1381_s25   ;;  %s1008_s24 = sphi %s1078_s24, %s1380_s24   ;;  %s1004_s23 = sphi %s1076_s23, %s1390_s23   ;;  %s1000_s22 = sphi %s1074_s22, %s1389_s22   ;;  %s996_s0 = sphi %s1072_s0, %s1388_s0   ;;  %s992_s21 = sphi %s1070_s21, %s1387_s21   ;;  %s988_s20 = sphi %s1068_s20, %s1386_s20  }
  0x17   : > { %1366 = sst [smem:[#allocation10_spill]] %s1020_s27  ;;  %p36_p5 = scmp.ge.s32.totalorder %s35_s5, 2 }
  0x18   : > { %1367 = sst [smem:[#allocation11_spill]] %s1024_s28  ;;  %s38_s6 = sadd.s32 1, %s1024_s28 }
  0x19   : > { %1368 = sst [smem:[#allocation12_spill]] %s1028_s29  ;;  %s664_s7 = sadd.s32 4294967295, %s1032_s30  }
  0x1a   : > { %s665_s8 = sadd.s32 4294967294, %s1032_s30   ;;  %s1392_s5 = smov (%p36_p5, %s35_s5), 0 }
  0x1b   : > { %1369 = sst [smem:[#allocation13_spill]] %s1392_s5  ;;  %s1394_s6 = smov (!%p36_p5, %s38_s6), %s1024_s28 }
  0x1c   : > { %s42_s9 = sadd.s32 1, %s1028_s29  ;;  %p88_p6 = scmp.ne.s32.totalorder %s1004_s23, %s1000_s22 }
  0x1d   : > { %p40_p7 = scmp.ge.s32.totalorder %s1394_s6, 2  ;;  %p89_p8 = scmp.eq.s32.totalorder %s1032_s30, 0 }
  0x1e   : > { %s74_s10 = sld [smem:[#allocation3 + %s1028_s29]]  ;;  %p149_p9 = scmp.ne.s32.totalorder %s996_s0, %s992_s21 }
  0x1f   : > { %s1396_s6 = smov (%p40_p7, %s1394_s6), 0  ;;  %s1398_s9 = smov (!%p40_p7, %s42_s9), %s1028_s29 }
  0x20   : > { %1370 = sst [smem:[#allocation14_spill]] %s1396_s6  ;;  %p1145_p10 = por %p89_p8, %p88_p6 }
  0x21   : > { %s135_s12 = ssub.s32 %s1024_s28, %s1396_s6  ;;  %p44_p11 = scmp.ge.s32.totalorder %s1398_s9, 4 }
  0x22   : > { %p150_p12 = scmp.eq.s32.totalorder %s664_s7, 15  ;;  %p155_p13 = scmp.ne.s32.totalorder %s992_s21, %s988_s20 }
  0x23   : > { %p156_p0 = scmp.eq.s32.totalorder %s665_s8, 15  ;;  %s1400_s9 = smov (%p44_p11, %s1398_s9), 0 }
  0x24   : > { %1372 = sst [smem:[#allocation15_spill]] %s1400_s9  ;;  %p1155_p1 = por %p150_p12, %p149_p9 }
  0x25   : > { %p1159_p2 = por %p156_p0, %p155_p13  ;;  %s75_s15 = sld [smem:[#allocation3 + %s1400_s9]] }
  0x26   : > { %s134_s16 = ssub.s32 %s1028_s29, %s1400_s9  ;;  %s139_s18 = sadd.s32 1, %s996_s0 }
  0x27   : > { %s136_s17 = sor.u32 %s135_s12, %s134_s16  ;;  %s77_s19 = ssub.s32 %s1020_s27, %s1392_s5 }
  0x28   : > { %p137_p3 = scmp.eq.s32.totalorder %s136_s17, 0  ;;  %s81_s28 = sadd.s32 1, %s1004_s23 }
  0x29   : > { %p667_p5 = scmp.ge.s32.totalorder %s1032_s30, 16 }
  0x2a   : > { %s1170_s7 = scalar_select %p137_p3, %s996_s0, %s139_s18  }
  0x2b   : > { %s76_s8 = ssub.s32 %s74_s10, %s75_s15  ;;  %172 = sbr.rel (%p667_p5) target bundleno = 69 (0x45), region = 16 }
  0x2c   : > { %s78_s6 = sor.u32 %s77_s19, %s76_s8 }
  0x2d   : > { %p79_p4 = scmp.eq.s32.totalorder %s78_s6, 0 }
  0x2f   : > { %s1174_s20 = scalar_select %p79_p4, %s1004_s23, %s81_s28  }
  0x31   : > { %1375 = sst [smem:[#allocation16_spill]] %s1174_s20 }
  0x32   : > { %186 = sbr.rel (!%p1145_p10) target bundleno = 69 (0x45), region = 24  ;;  %s191_s12 = sld [smem:[#allocation3 + %s1028_s29]] (%p1145_p10) }
  0x33   : > { %s188_s16 = sand.u32 (%p1145_p10), 1, %s1004_s23   ;;  %s669_s17 = sshll.u32 (%p1145_p10), %s1020_s27, 1 }
  0x34   : > { %s668_s18 = sshll.u32 (%p1145_p10), %s188_s16, 7  ;;  %s1376_s2 = sld [smem:[#allocation17_spill]] (%p1145_p10) }
  0x35   : > { %s190_s11 = scalar_lea.vmem (%p1145_p10), [#allocation4], %s668_s18 }
  0x38   : > { %s670_s9 = sshll.u32 (%p1145_p10), %s191_s12, 5 }
  0x39   : > { %s194_s10 = sadd.s32 %s670_s9, %s669_s17 }
  0x3a   : > { %s671_s15 = sshll.u32 %s194_s10, 3 }
  0x3b   : > { %s1185_s28 = scalar_lea.vmem %s1376_s2, %s671_s15 }
  0x3c   : > { %v209_v0 = vld [vmem:[%s1185_s28] sm:$0xff]  ;;  %v211_v1 = vld [vmem:[%s1185_s28 + $0x8] sm:$0xff] }
  0x3d   : > { %v213_v2 = vld [vmem:[%s1185_s28 + $0x20] sm:$0xff]  ;;  %210 = vst [vmem:[%s190_s11] sm:$0xff] %v209_v0  ;;  %212 = vst [vmem:[%s190_s11 + $0x8] sm:$0xff] %v211_v1  ;;  %v215_v3 = vld [vmem:[%s1185_s28 + $0x28] sm:$0xff] }
  0x3e   : > { %214 = vst [vmem:[%s190_s11 + $0x10] sm:$0xff] %v213_v2  ;;  %v217_v4 = vld [vmem:[%s1185_s28 + $0x40] sm:$0xff]  ;;  %v219_v5 = vld [vmem:[%s1185_s28 + $0x48] sm:$0xff]  ;;  %216 = vst [vmem:[%s190_s11 + $0x18] sm:$0xff] %v215_v3 }
  0x3f   : > { %218 = vst [vmem:[%s190_s11 + $0x20] sm:$0xff] %v217_v4  ;;  %220 = vst [vmem:[%s190_s11 + $0x28] sm:$0xff] %v219_v5  ;;  %v221_v6 = vld [vmem:[%s1185_s28 + $0x60] sm:$0xff]  ;;  %v223_v7 = vld [vmem:[%s1185_s28 + $0x68] sm:$0xff] }
  0x40   : > { %v225_v8 = vld [vmem:[%s1185_s28 + $0x80] sm:$0xff]  ;;  %222 = vst [vmem:[%s190_s11 + $0x30] sm:$0xff] %v221_v6  ;;  %224 = vst [vmem:[%s190_s11 + $0x38] sm:$0xff] %v223_v7  ;;  %v227_v9 = vld [vmem:[%s1185_s28 + $0x88] sm:$0xff] }
  0x41   : > { %226 = vst [vmem:[%s190_s11 + $0x40] sm:$0xff] %v225_v8  ;;  %v229_v10 = vld [vmem:[%s1185_s28 + $0xa0] sm:$0xff]  ;;  %v231_v11 = vld [vmem:[%s1185_s28 + $0xa8] sm:$0xff]  ;;  %228 = vst [vmem:[%s190_s11 + $0x48] sm:$0xff] %v227_v9 }
  0x42   : > { %230 = vst [vmem:[%s190_s11 + $0x50] sm:$0xff] %v229_v10  ;;  %232 = vst [vmem:[%s190_s11 + $0x58] sm:$0xff] %v231_v11  ;;  %v233_v12 = vld [vmem:[%s1185_s28 + $0xc0] sm:$0xff]  ;;  %v235_v13 = vld [vmem:[%s1185_s28 + $0xc8] sm:$0xff] }
  0x43   : > { %v237_v14 = vld [vmem:[%s1185_s28 + $0xe0] sm:$0xff]  ;;  %234 = vst [vmem:[%s190_s11 + $0x60] sm:$0xff] %v233_v12  ;;  %236 = vst [vmem:[%s190_s11 + $0x68] sm:$0xff] %v235_v13  ;;  %v239_v15 = vld [vmem:[%s1185_s28 + $0xe8] sm:$0xff] }
  0x44   : > { %238 = vst [vmem:[%s190_s11 + $0x70] sm:$0xff] %v237_v14  ;;  %240 = vst [vmem:[%s190_s11 + $0x78] sm:$0xff] %v239_v15 }
  0x45 PF: > { %p672_p6 = scmp.ge.s32.totalorder %s1032_s30, 1  ;;  %p260_p7 = scmp.lt.s32.totalorder %s1032_s30, 17 }
  0x47   : > { %p261_p8 = pnand %p672_p6, %p260_p7 }
  0x48   : > { %s267_s9 = sand.u32 (!%p261_p8), 1, %s1000_s22   ;;  %s1361_s8 = sand.u32 (!%p261_p8), 1, %s992_s21  }
  0x49   : > { %264 = sbr.rel (%p261_p8) target bundleno = 584 (0x248), region = 51  ;;  %s673_s12 = sshll.u32 (!%p261_p8), %s267_s9, 7 }
  0x4a   : > { %s674_s16 = sshll.u32 (!%p261_p8), %s1361_s8, 3  ;;  %p308_p9 = scmp.lt.s32.totalorder (!%p261_p8), %s1016_s26, 3 }
  0x4b   : > { %p310_p10 = scmp.lt.s32.totalorder (!%p261_p8), %s1012_s25, 1  ;;  %s318_s17 = sld [smem:[#allocation3 + %s1016_s26]] (!%p261_p8) }
  0x4c   : > { %s677_s18 = sshll.u32 (!%p261_p8), %s1008_s24, 4  ;;  %p680_p13 = scmp.ne.s32.totalorder (!%p261_p8), %s1008_s24, 0 }
  0x4d   : > { %p322_p11 = scmp.lt.s32.totalorder (!%p261_p8), %s677_s18, 31 }
  0x50   : > { %s309_s10 = scalar_select %p308_p9, %s1016_s26, 3 }
  0x51   : > { %s311_s15 = scalar_select %p310_p10, %s1012_s25, 1 }
  0x52   : > { %s675_s19 = sshll.u32 %s309_s10, 1  ;;  %p320_p12 = scmp.lt.s32.totalorder %s318_s17, 3  ;;  %vm334_vm0 = vcmask (!%p680_p13), 523264   ;;  %v1035_v16 = vmov (!%p680_p13), 0.0  }
  0x53   : > { %s313_s6 = sadd.s32 %s675_s19, %s311_s15  ;;  %s1402_s18 = smov (!%p322_p11, %s677_s18), 31 }
  0x54   : > { %s676_s28 = sshll.u32 %s313_s6, 3  ;;  %s1404_s17 = smov (!%p320_p12, %s318_s17), 3 }
  0x55   : > { %s1218_s5 = scalar_lea.vmem %s1352_s1, %s676_s28  ;;  %s678_s22 = sshll.u32 %s1404_s17, 5 }
  0x56   : > { %s325_s9 = sadd.s32 %s678_s22, %s1402_s18  ;;  %s1225_s10 = scalar_lea.vmem [#allocation4], %s673_s12 }
  0x57   : > { %s679_s8 = sshll.u32 %s325_s9, 3  ;;  %s1227_s15 = scalar_lea.vmem [#allocation5], %s674_s16 }
  0x58   : > { %s1223_s20 = scalar_lea.vmem %s1354_s3, %s679_s8  ;;  %333 = sbr.rel (%p680_p13) target bundleno = 95 (0x5f), region = 59  ;;  %335 = vst.msk [vmem:[%s1227_s15] sm:$0xff] (!%p680_p13), %vm334_vm0, %v1035_v16 }
  0x5f PF: > { %v338_v17 = vld [vmem:[%s1225_s10 + $0x8] sm:$0xff]  ;;  %v340_v18 = vld [vmem:[%s1225_s10 + $0x18] sm:$0xff]  ;;  %v337_v19 = vld [vmem:[%s1225_s10] sm:$0xff]  ;;  %v1036_v24 = vmov 0.0   ;;  %v1037_v25 = vmov 0.0|0.0   ;;  %vm353_vm1 = vcmask 523264  }
  0x60   : > { %v740_v20 = vpack.c.bf16 %v340_v18, %v338_v17  ;;  %v339_v21 = vld [vmem:[%s1225_s10 + $0x10] sm:$0xff]  ;;  %v342_v22 = vld [vmem:[%s1225_s10 + $0x28] sm:$0xff]  ;;  %v344_v23 = vld [vmem:[%s1225_s10 + $0x38] sm:$0xff]  ;;  %421 = vmatprep.mubr.f32.mxu0 %v1036_v24  ;;  %756 = vmatprep.subr.bf16.mxu1 %v1037_v25  ;;  %vm1038_vm2 = vmmov 0   ;;  %s684_s2 = sshll.u32 %s1016_s26, 1  ;;  %s541_s27 = sshll.u32 %s1227_s15, 4  ;;  %s1284_s27 = int_to_ptr.vmem [resolvable:$true] %s541_s27 }
  0x61   : > { %v742_v26 = vpack.c.bf16 %v339_v21, %v337_v19  ;;  %v744_v27 = vpack.c.bf16 %v344_v23, %v342_v22  ;;  %v341_v28 = vld [vmem:[%s1225_s10 + $0x20] sm:$0xff]  ;;  %v343_v29 = vld [vmem:[%s1225_s10 + $0x30] sm:$0xff]  ;;  %v346_v30 = vld [vmem:[%s1225_s10 + $0x48] sm:$0xff]  ;;  %737 = vmatprep.mubr.msk.f32.mxu1 %vm1038_vm2, %v1036_v24  ;;  %s1377_s26 = sand.u32 1, %s992_s21   ;;  %s904_s12 = scalar_lea.vmem %s1284_s27, 128 }
  0x62   : > { %741 = vmatprep.subr.bf16.mxu0 %v740_v20  ;;  %v348_v31 = vld [vmem:[%s1225_s10 + $0x58] sm:$0xff]  ;;  %v746_v32 = vpack.c.bf16 %v343_v29, %v341_v28  ;;  %v345_v34 = vld [vmem:[%s1225_s10 + $0x40] sm:$0xff]  ;;  %v347_v35 = vld [vmem:[%s1225_s10 + $0x50] sm:$0xff]  ;;  %p905_p0 = scmp.ne.s32.totalorder %s1284_s27, %s904_s12  ;;  %s1039_s16 = smov [#allocation5]  }
  0x63   : > { %743 = vmatpush1.bf16.msra.mxu0 %v742_v26  ;;  %v748_v33 = vpack.c.bf16 %v348_v31, %v346_v30  ;;  %v350_v36 = vld [vmem:[%s1225_s10 + $0x68] sm:$0xff]  ;;  %v352_v37 = vld [vmem:[%s1225_s10 + $0x78] sm:$0xff]  ;;  %v750_v38 = vpack.c.bf16 %v347_v35, %v345_v34  ;;  %v349_v40 = vld [vmem:[%s1225_s10 + $0x60] sm:$0xff]  ;;  %s908_s17 = sshll.u32 %s1039_s16, 4  ;;  %s909_s17 = int_to_ptr.vmem [resolvable:$false] %s908_s17 }
  0x64   : > { %745 = vmatprep.subr.bf16.mxu0 %v744_v27  ;;  %v752_v39 = vpack.c.bf16 %v352_v37, %v350_v36  ;;  %v351_v41 = vld [vmem:[%s1225_s10 + $0x70] sm:$0xff]  ;;  %v336_v43 = vld [vmem:[%s1218_s5] sm:$0xff]  ;;  %v438_v45 = vld [vmem:[%s1223_s20 + $0x8] sm:$0xff]  ;;  %p906_p3 = pnand %p905_p0, %p1155_p1  ;;  %s910_s18 = scalar_lea.vmem %s909_s17, 256 }
  0x65   : > { %v754_v42 = vpack.c.bf16 %v351_v41, %v349_v40  ;;  %v437_v44 = vld [vmem:[%s1223_s20] sm:$0xff]  ;;  %v439_v47 = vld [vmem:[%s1223_s20 + $0x10] sm:$0xff]  ;;  %v440_v48 = vld [vmem:[%s1223_s20 + $0x18] sm:$0xff]  ;;  %p911_p5 = scmp.lt.s32.totalorder %s1284_s27, %s909_s17  ;;  %p912_p6 = scmp.lt.s32.totalorder %s910_s18, %s904_s12 }
  0x66   : > { %v757_v46 = vpack.c.bf16 %v438_v45, %v437_v44  ;;  %v760_v49 = vpack.c.bf16 %v440_v48, %v439_v47  ;;  %v441_v50 = vld [vmem:[%s1223_s20 + $0x20] sm:$0xff]  ;;  %v442_v51 = vld [vmem:[%s1223_s20 + $0x28] sm:$0xff]  ;;  %v443_v53 = vld [vmem:[%s1223_s20 + $0x30] sm:$0xff]  ;;  %p907_p4 = pneg %p906_p3 }
  0x67   : > { %747 = vmatpush1.bf16.msra.mxu0 %v746_v32  ;;  %v763_v52 = vpack.c.bf16 %v442_v51, %v441_v50  ;;  %v444_v54 = vld [vmem:[%s1223_s20 + $0x38] sm:$0xff]  ;;  %v445_v56 = vld [vmem:[%s1223_s20 + $0x40] sm:$0xff]  ;;  %v446_v57 = vld [vmem:[%s1223_s20 + $0x48] sm:$0xff]  ;;  %p913_p7 = por %p912_p6, %p911_p5 }
  0x68   : > { %749 = vmatprep.subr.bf16.mxu0 %v748_v33  ;;  %758 = vmatpush3.bf16.msra.mxu1 %v757_v46  ;;  %v766_v55 = vpack.c.bf16 %v444_v54, %v443_v53  ;;  %v769_v58 = vpack.c.bf16 %v446_v57, %v445_v56  ;;  %v447_v59 = vld [vmem:[%s1223_s20 + $0x50] sm:$0xff]  ;;  %v448_v60 = vld [vmem:[%s1223_s20 + $0x58] sm:$0xff]  ;;  %v449_v62 = vld [vmem:[%s1223_s20 + $0x60] sm:$0xff] }
  0x69   : > { %759 = vmatprep.subr.bf16.mxu1 %v1037_v25  ;;  %v772_v61 = vpack.c.bf16 %v448_v60, %v447_v59  ;;  %v450_v63 = vld [vmem:[%s1223_s20 + $0x68] sm:$0xff]  ;;  %v451_v1 = vld [vmem:[%s1223_s20 + $0x70] sm:$0xff]  ;;  %v452_v2 = vld [vmem:[%s1223_s20 + $0x78] sm:$0xff]  ;;  %s537_s20 = sadd.s32 %s1012_s25, %s684_s2  ;;  %s526_s25 = scalar_lea.sflag [#allocation6], %s1377_s26 }
  0x6a   : > { %v775_v0 = vpack.c.bf16 %v450_v63, %v449_v62  ;;  %v778_v3 = vpack.c.bf16 %v452_v2, %v451_v1  ;;  %v436_v12 = vld [vmem:[%s1227_s15] sm:$0xff]  ;;  %s685_s24 = sshll.u32 %s537_s20, 7  ;;  %p914_p8 = pnand %p913_p7, %p907_p4 }
  0x6b   : > { %751 = vmatpush1.bf16.msra.mxu0 %v750_v38  ;;  %s1282_s8 = scalar_lea.hbm %s1355_s4, %s685_s24 }
  0x6c   : > { %753 = vmatprep.subr.bf16.mxu0 %v752_v39  ;;  %761 = vmatpush3.bf16.msra.mxu1 %v760_v49 }
  0x6d   : > { %762 = vmatprep.subr.bf16.mxu1 %v1037_v25 }
  0x6f   : > { %755 = vmatpush1.bf16.msra.mxu0 %v754_v42 }
  0x70   : > { %764 = vmatpush3.bf16.msra.mxu1 %v763_v52 }
  0x71   : > { %765 = vmatprep.subr.bf16.mxu1 %v1037_v25 }
  0x72   : > { %681 = vmatmul.mubr.msk.f32.vlgmr.msra.gmra.mrb[0].mxu0 %vm353_vm1, %v336_v43 }
  0x74   : > { %767 = vmatpush3.bf16.msra.mxu1 %v766_v55 }
  0x75   : > { %768 = vmatprep.subr.bf16.mxu1 %v1037_v25 }
  0x78   : > { %770 = vmatpush3.bf16.msra.mxu1 %v769_v58 }
  0x79   : > { %771 = vmatprep.subr.bf16.mxu1 %v1037_v25 }
  0x7c   : > { %773 = vmatpush3.bf16.msra.mxu1 %v772_v61 }
  0x7d   : > { %774 = vmatprep.subr.bf16.mxu1 %v1037_v25 }
  0x80   : > { %776 = vmatpush3.bf16.msra.mxu1 %v775_v0 }
  0x81   : > { %777 = vmatprep.subr.bf16.mxu1 %v1037_v25 }
  0x84   : > { %779 = vmatpush3.bf16.msra.mxu1 %v778_v3 }
 0x145   : > { %v423_v4 = vpop.f32.mrb[0].mxu0 }
 0x146   : > { %v682_v5 = vmul.f32 -1.442695, %v423_v4  ;;  %v425_v6 = vpop.f32.mrb[1].mxu0 }
 0x148   : > { %888 = vpow2.f32 %v682_v5 }
 0x152   : > { %v889_v7 = vpop.eup %888 }
 0x153   : > { %v431_v8 = vadd.f32 1.0, %v889_v7 }
 0x155   : > { %890 = vrcp.f32 %v431_v8 }
 0x15f   : > { %v891_v9 = vpop.eup %890 }
 0x160   : > { %v434_v10 = vmul.f32 %v891_v9, %v423_v4 }
 0x162   : > { %v435_v11 = vmul.f32 %v434_v10, %v425_v6 }
 0x164   : > { %738 = vmatmul.mubr.f32.vlgmr.msra.gmra.mrb[0].mxu1 %v435_v11 }
 0x237   : > { %v519_v13 = vpop.f32.mrb[0].mxu1 }
 0x238   : > { %v523_v14 = vadd.f32 %v519_v13, %v436_v12  ;;  %v739_v15 = vpop.f32.mrb[1].mxu1 }
 0x23a   : > { %524 = vst.msk [vmem:[%s1227_s15] sm:$0xff] %vm353_vm1, %v523_v14 }
 0x23b   : > { %917 = shalt.err (!%p914_p8)
}
 0x23c   : > { %s918_s19 = scalar_lea.hbm %s1282_s8, 128  ;;  %s922_s11 = scalar_lea.hbm %s1355_s4, 1024 }
 0x23d   : > { %p919_p9 = scmp.ne.s32.totalorder %s1282_s8, %s918_s19  ;;  %p923_p12 = scmp.lt.u32.totalorder %s1282_s8, %s1355_s4 }
 0x23e   : > { %p924_p13 = scmp.lt.u32.totalorder %s922_s11, %s918_s19  ;;  %p926_p3 = scmp.lt.u32.totalorder %s918_s19, %s1282_s8 }
 0x23f   : > { %p920_p10 = pnand %p919_p9, %p1155_p1 }
 0x240   : > { %p925_p0 = por %p924_p13, %p923_p12 }
 0x241   : > { %p921_p11 = pneg %p920_p10 }
 0x242   : > { %p927_p4 = por %p926_p3, %p925_p0 }
 0x244   : > { %p928_p5 = pnand %p927_p4, %p921_p11 }
 0x246   : > { %931 = shalt.err (!%p928_p5)
}
 0x247   : > { %780 = dma.vmem_to_hbm [thread:$0]  (%p1155_p1), %s1284_s27, 128, %s1282_s8, %s526_s25  }
 0x248 PF: > { %s1378_s10 = sld [smem:[#allocation9_spill]]  ;;  %p786_p6 = scmp.ge.s32.totalorder %s1032_s30, 2 }
 0x24a   : > { %p783_p7 = pnand %p786_p6, %p1159_p2 }
 0x24e   : > { %s553_s15 = sand.u32 1, %s1378_s10  }
 0x24f   : > { %s554_s2 = scalar_lea.sflag [#allocation6], %s553_s15 }
 0x250   : > { %983 = dma.done.wait (!%p783_p7), %s554_s2, 128  }
 0x251   : > { %985 = vsyncadd (!%p783_p7), %s554_s2, 4294967168  ;;  %s23_s30 = sadd.s32 1, %s1032_s30   ;;  %s1379_s13 = sld [smem:[#allocation16_spill]] }
 0x252   : > { %p20_p8 = scmp.ge.s32.totalorder %s23_s30, 18   ;;  %s1380_s24 = sld [smem:[#allocation10_spill]] }
 0x253   : > { %s1381_s25 = sld [smem:[#allocation11_spill]]  ;;  %s1382_s26 = sld [smem:[#allocation12_spill]] }
 0x254   : > { %s1383_s27 = sld [smem:[#allocation13_spill]]  ;;  %s1384_s28 = sld [smem:[#allocation14_spill]] }
 0x255   : > { %s1385_s29 = sld [smem:[#allocation15_spill]]  ;;  %s1386_s20 = smov %s992_s21 }
 0x256   : > { %s1387_s21 = smov %s996_s0  ;;  %s1388_s0 = smov %s1170_s7 }
 0x257   : > { %s1389_s22 = smov %s1004_s23  ;;  %s1390_s23 = smov %s1379_s13 }
 0x258   :  { %22 = sbr.rel (!%p20_p8) target bundleno = 22 (0x16), region = 105 }
 0x25f   :  { %559 = vsyncpa [#allocation6], 1 }
 0x260   :  { %561 = vsyncpa [#allocation6 + $0x1], 1 }

</bundles_post_ra>
